<compile_context>
chip_gen: v5e
topology: v5e:2x2
jax: 0.10.0
libtpu: 0.0.40
codegen_flags: <defaults>
</compile_context>

<pallas_src>
import math

import jax
import jax.numpy as jnp
from jax.experimental import pallas as pl
from jax.experimental.pallas import tpu as pltpu


def _round_up(x, m):
    return ((x + m - 1) // m) * m


# ---------------------------------------------------------------------------
# Kernel:  acc[i,j] += adj[i,k] @ support[k,j];  finalize: out = acc + bias
# Grid (i, j, k) with the reduction axis k last; j is usually a single tile.
# ---------------------------------------------------------------------------
def _adj_support_kernel(adj_ref, s_ref, b_ref, o_ref, acc_ref):
    k = pl.program_id(2)

    @pl.when(k == 0)
    def _():
        acc_ref[...] = jnp.zeros_like(acc_ref)

    acc_ref[...] += jnp.dot(adj_ref[...], s_ref[...],
                            preferred_element_type=jnp.float32)

    @pl.when(k == pl.num_programs(2) - 1)
    def _():
        o_ref[...] = (acc_ref[...] + b_ref[...]).astype(o_ref.dtype)


def _tile_footprint_bytes(tm, tk, tn, esize):
    """Double-buffered inputs/outputs + f32 accumulator scratch."""
    return (2 * tm * tk * esize        # adj tiles (double-buffered)
            + 2 * tk * tn * esize      # support tiles (double-buffered)
            + 2 * 1 * tn * 4           # bias tiles
            + 2 * tm * tn * 4          # output tiles
            + tm * tn * 4)             # accumulator scratch


def graph_convolution(x, adj, weight, bias=None, *,
                      compute_dtype=jnp.bfloat16,
                      tn_cap=2048,
                      use_pallas=None):
    """GCN forward: adj @ (x @ weight) + bias.

    x:      [N, F_in]     adj: [N, N]     weight: [F_in, F_out]
    bias:   [F_out] or None
    returns [N, F_out] float32

    support = x @ weight is computed with a plain XLA dot (cheap, N*F_in*F_out)
    and the Pallas kernel streams the N^2 adjacency once, accumulating in f32.
    compute_dtype controls the MXU/HBM dtype of adj & support (bf16 default).
    """
    n, f_in = x.shape
    assert weight.shape[0] == f_in
    f_out = weight.shape[1]
    assert adj.shape == (n, n)
    out_dtype = jnp.float32

    if use_pallas is None:
        # Tiny problems: a single fused XLA dot beats any hand kernel.
        use_pallas = max(n, f_in, f_out) > 64
    if not use_pallas:
        out = adj @ (x @ weight)
        if bias is not None:
            out = out + bias
        return out.astype(out_dtype)

    cdt = jnp.dtype(compute_dtype)
    esize = cdt.itemsize
    lane = 128

    # ---- shapes / tiles -----------------------------------------------------
    n_p = _round_up(n, lane)
    f_out_p = _round_up(f_out, lane)
    if f_out_p <= tn_cap:
        tn = f_out_p                      # collapse the j grid (common case)
    else:
        tn = tn_cap                       # huge f_out: tile j (adj re-streamed)
        f_out_p = _round_up(f_out, tn)

    # tm: prefer 256-wide MXU tiles, but keep >=2 i-tiles when possible (v7x).
    tm = 256 if (n_p % 256 == 0 and n_p >= 512) else 128
    tm = min(tm, n_p)

    # tk: largest candidate that divides n_p and keeps the tile footprint
    # within a v7x-safe VMEM budget.
    TILE_BUDGET = 36 * 1024 * 1024
    tk = 128
    for cand in (2048, 1024, 512, 256, 128):
        if n_p % cand == 0 and _tile_footprint_bytes(tm, cand, tn, esize) <= TILE_BUDGET:
            tk = cand
            break

    # ---- host-side prep (support precompute, pad/cast only when needed) ----
    support = jnp.dot(x.astype(jnp.float32), weight.astype(jnp.float32),
                      preferred_element_type=jnp.float32,
                      precision=jax.lax.Precision.HIGHEST)      # [n, f_out]

    if n_p == n and adj.dtype == cdt:
        adj_p = adj                                   # no pad, no cast, no copy
    elif n_p == n:
        adj_p = adj.astype(cdt)                       # cast only
    else:
        adj_p = jnp.zeros((n_p, n_p), cdt).at[:n, :n].set(adj.astype(cdt))

    if n_p == n and f_out_p == f_out:
        s_p = support.astype(cdt)                     # single rounding to cdt
    else:
        s_p = jnp.zeros((n_p, f_out_p), cdt).at[:n, :f_out].set(
            support.astype(cdt))

    b = bias if bias is not None else jnp.zeros((f_out,), jnp.float32)
    b_p = jnp.zeros((1, f_out_p), jnp.float32).at[0, :f_out].set(
        b.astype(jnp.float32))

    grid = (n_p // tm, f_out_p // tn, n_p // tk)      # reduction axis last

    # ---- cost estimate (actual kernel traffic) ------------------------------
    j_tiles = f_out_p // tn
    i_tiles = n_p // tm
    cost = pl.CostEstimate(
        flops=int(2 * n_p * n_p * f_out_p),
        transcendentals=0,
        bytes_accessed=int(
            j_tiles * n_p * n_p * esize          # adj read (once per j-tile)
            + i_tiles * n_p * f_out_p * esize    # support read (once per i-tile)
            + i_tiles * f_out_p * 4              # bias read
            + n_p * f_out_p * 4),                # output write
    )

    footprint = _tile_footprint_bytes(tm, tk, tn, esize)
    vmem_limit = max(32 * 1024 * 1024,
                     min(footprint + 12 * 1024 * 1024, 56 * 1024 * 1024))

    out_p = pl.pallas_call(
        _adj_support_kernel,
        out_shape=jax.ShapeDtypeStruct((n_p, f_out_p), out_dtype),
        grid=grid,
        in_specs=[
            pl.BlockSpec((tm, tk), lambda i, j, k: (i, k)),   # adj tile
            pl.BlockSpec((tk, tn), lambda i, j, k: (k, j)),   # support tile
            pl.BlockSpec((1, tn), lambda i, j, k: (0, j)),    # bias
        ],
        out_specs=pl.BlockSpec((tm, tn), lambda i, j, k: (i, j)),
        scratch_shapes=[pltpu.VMEM((tm, tn), jnp.float32)],
        compiler_params=pltpu.CompilerParams(
            dimension_semantics=("parallel", "parallel", "arbitrary"),
            vmem_limit_bytes=int(vmem_limit),
        ),
        cost_estimate=cost,
    )(adj_p, s_p, b_p)

    return out_p[:n, :f_out]


# ---------------------------------------------------------------------------
# Reference + test harness
# ---------------------------------------------------------------------------
def _reference(x, adj, weight, bias):
    support = jnp.dot(x, weight, precision=jax.lax.Precision.HIGHEST)
    out = jnp.dot(adj, support, precision=jax.lax.Precision.HIGHEST)
    if bias is not None:
        out = out + bias
    return out


def _make_inputs(key, n, f_in, f_out, with_bias=True):
    k_w, k_b, k_x, k_adj = jax.random.split(key, 4)
    stdv = 1.0 / (f_out ** 0.5)  # reset_parameters(): uniform(-stdv, stdv)
    weight = jax.random.uniform(k_w, (f_in, f_out), minval=-stdv, maxval=stdv,
                                dtype=jnp.float32)
    bias = (jax.random.uniform(k_b, (f_out,), minval=-stdv, maxval=stdv,
                               dtype=jnp.float32) if with_bias else None)
    x = jax.random.normal(k_x, (n, f_in), dtype=jnp.float32)
    adj_raw = jax.random.uniform(k_adj, (n, n), dtype=jnp.float32)
    adj = adj_raw / jnp.sum(adj_raw, axis=1, keepdims=True)  # row-normalized
    return x, adj, weight, bias


if __name__ == "__main__":
    key = jax.random.PRNGKey(0)
    k1, k2, k3 = jax.random.split(key, 3)

    # Config 1: non-multiple shapes exercise padding (N=200 -> 256, 2 i-tiles).
    x1, adj1, w1, b1 = _make_inputs(k1, n=200, f_in=48, f_out=80, with_bias=True)
    ref1 = _reference(x1, adj1, w1, b1)
    out1 = jax.block_until_ready(
        graph_convolution(x1, adj1, w1, b1, compute_dtype=jnp.float32))
    assert out1.shape == (200, 80)
    assert jnp.allclose(out1, ref1, atol=1e-4, rtol=1e-4), "f32 mismatch (cfg1)"

    # Same config with the bf16 default (f32 accumulation, looser tolerance).
    out1_bf = jax.block_until_ready(graph_convolution(x1, adj1, w1, b1))
    assert jnp.allclose(out1_bf, ref1, atol=3e-2, rtol=3e-2), "bf16 mismatch"

    # Config 2: N already 128-aligned -> no-pad/no-copy adj path; no bias.
    x2, adj2, w2, _ = _make_inputs(k2, n=256, f_in=64, f_out=192, with_bias=False)
    ref2 = _reference(x2, adj2, w2, None)
    out2 = jax.block_until_ready(
        graph_convolution(x2, adj2, w2, None, compute_dtype=jnp.float32))
    assert out2.shape == (256, 192)
    assert jnp.allclose(out2, ref2, atol=1e-4, rtol=1e-4), "f32 mismatch (cfg2)"

    # Config 3: tiny problem -> plain XLA fallback path.
    x3, adj3, w3, b3 = _make_inputs(k3, n=32, f_in=16, f_out=8, with_bias=True)
    out3 = jax.block_until_ready(graph_convolution(x3, adj3, w3, b3))
    assert jnp.allclose(out3, _reference(x3, adj3, w3, b3),
                        atol=1e-4, rtol=1e-4), "fallback mismatch"

    print("KERNEL_OK")
</pallas_src>

<mosaic_0001>
module attributes {stable_mosaic.version = 11 : i64} {
  func.func @_adj_support_kernel(%arg0: i32, %arg1: i32, %arg2: i32, %arg3: memref<128x256xf32, #tpu.memory_space<vmem>>, %arg4: memref<256x128xf32, #tpu.memory_space<vmem>>, %arg5: memref<1x128xf32, #tpu.memory_space<vmem>>, %arg6: memref<128x128xf32, #tpu.memory_space<vmem>>, %arg7: memref<128x128xf32, #tpu.memory_space<vmem>>) attributes {dimension_semantics = [#tpu.dimension_semantics<parallel>, #tpu.dimension_semantics<parallel>, #tpu.dimension_semantics<arbitrary>], iteration_bounds = array<i64: 2, 1, 1>, scalar_prefetch = 0 : i64, scratch_operands = 1 : i64, tpu.core_type = #tpu.core_type<tc>, window_params = [{transform_indices = @transform_0, window_bounds = array<i64: 128, 256>}, {transform_indices = @transform_1, window_bounds = array<i64: 256, 128>}, {transform_indices = @transform_2, window_bounds = array<i64: 1, 128>}, {transform_indices = @transform_3, window_bounds = array<i64: 128, 128>}]} {
    %c0_i32 = arith.constant 0 : i32
    %0 = arith.cmpi eq, %arg2, %c0_i32 : i32
    %1 = arith.extui %0 : i1 to i32
    %c0_i32_0 = arith.constant 0 : i32
    %2 = arith.cmpi ne, %1, %c0_i32_0 : i32
    scf.if %2 {
      %cst_10 = arith.constant 0.000000e+00 : f32
      %12 = vector.broadcast %cst_10 : f32 to vector<128x128xf32>
      %c0_11 = arith.constant 0 : index
      %c0_12 = arith.constant 0 : index
      %13 = vector.load %arg7[%c0_11, %c0_12] : memref<128x128xf32, #tpu.memory_space<vmem>>, vector<128x128xf32>
      tpu.vector_store %arg7[%c0_11, %c0_12], %12 {strides = array<i32>} : memref<128x128xf32, #tpu.memory_space<vmem>>, vector<128x128xf32>,
    } else {
    }
    %c0 = arith.constant 0 : index
    %c0_1 = arith.constant 0 : index
    %3 = vector.load %arg7[%c0, %c0_1] : memref<128x128xf32, #tpu.memory_space<vmem>>, vector<128x128xf32>
    %c0_2 = arith.constant 0 : index
    %c0_3 = arith.constant 0 : index
    %4 = vector.load %arg3[%c0_2, %c0_3] : memref<128x256xf32, #tpu.memory_space<vmem>>, vector<128x256xf32>
    %c0_4 = arith.constant 0 : index
    %c0_5 = arith.constant 0 : index
    %5 = vector.load %arg4[%c0_4, %c0_5] : memref<256x128xf32, #tpu.memory_space<vmem>>, vector<256x128xf32>
    %cst = arith.constant dense<0.000000e+00> : vector<128x128xf32>
    %6 = tpu.matmul %4, %5, %cst {dimension_numbers = #tpu.dot_dimension_numbers<[1], [0], [0], [1], [0, 0, 1, 1], [], []>} : vector<128x256xf32>, vector<256x128xf32>, vector<128x128xf32> -> vector<128x128xf32>
    %7 = arith.addf %3, %6 : vector<128x128xf32>
    %c0_6 = arith.constant 0 : index
    %c0_7 = arith.constant 0 : index
    %8 = vector.load %arg7[%c0_6, %c0_7] : memref<128x128xf32, #tpu.memory_space<vmem>>, vector<128x128xf32>
    tpu.vector_store %arg7[%c0_6, %c0_7], %7 {strides = array<i32>} : memref<128x128xf32, #tpu.memory_space<vmem>>, vector<128x128xf32>,
    %c0_i32_8 = arith.constant 0 : i32
    %9 = arith.cmpi eq, %arg2, %c0_i32_8 : i32
    %10 = arith.extui %9 : i1 to i32
    %c0_i32_9 = arith.constant 0 : i32
    %11 = arith.cmpi ne, %10, %c0_i32_9 : i32
    scf.if %11 {
      %c0_10 = arith.constant 0 : index
      %c0_11 = arith.constant 0 : index
      %12 = vector.load %arg7[%c0_10, %c0_11] : memref<128x128xf32, #tpu.memory_space<vmem>>, vector<128x128xf32>
      %c0_12 = arith.constant 0 : index
      %c0_13 = arith.constant 0 : index
      %13 = vector.load %arg5[%c0_12, %c0_13] : memref<1x128xf32, #tpu.memory_space<vmem>>, vector<1x128xf32>
      %14 = vector.broadcast %13 : vector<1x128xf32> to vector<128x128xf32>
      %15 = arith.addf %12, %14 : vector<128x128xf32>
      %c0_14 = arith.constant 0 : index
      %c0_15 = arith.constant 0 : index
      %16 = vector.load %arg6[%c0_14, %c0_15] : memref<128x128xf32, #tpu.memory_space<vmem>>, vector<128x128xf32>
      tpu.vector_store %arg6[%c0_14, %c0_15], %15 {strides = array<i32>} : memref<128x128xf32, #tpu.memory_space<vmem>>, vector<128x128xf32>,
    } else {
    }
    return
  }
  func.func @transform_0(%arg0: i32, %arg1: i32, %arg2: i32) -> (i32, i32) {
    %c0_i32 = arith.constant 0 : i32
    return %arg0, %arg2 : i32, i32
  }
  func.func @transform_1(%arg0: i32, %arg1: i32, %arg2: i32) -> (i32, i32) {
    %c0_i32 = arith.constant 0 : i32
    return %arg2, %arg1 : i32, i32
  }
  func.func @transform_2(%arg0: i32, %arg1: i32, %arg2: i32) -> (i32, i32) {
    %c0_i32 = arith.constant 0 : i32
    %c0_i32_0 = arith.constant 0 : i32
    return %c0_i32, %arg1 : i32, i32
  }
  func.func @transform_3(%arg0: i32, %arg1: i32, %arg2: i32) -> (i32, i32) {
    %c0_i32 = arith.constant 0 : i32
    return %arg0, %arg1 : i32, i32
  }
}

</mosaic_0001>

<bundles_post_ra>
// kernel: tpu_custom_call.1
= control target key start
LH: loop header
LB: loop body
LE: loop exit
PB: predicated region body
PF: predicated region fallthrough
CT: control target
= control target key end

     0   :  { %s1245_s0 = inlined_call_operand.hbm [shape: f32[256,256], index: 0, kind: input, shape index: {}]   ;;  %s1246_s1 = inlined_call_operand.hbm [shape: f32[256,128], index: 1, kind: input, shape index: {}]   ;;  %s1247_s2 = inlined_call_operand.vmem [shape: f32[1,128], index: 2, kind: input, shape index: {}]   ;;  %s1248_s3 = inlined_call_operand.hbm [shape: f32[256,128], index: 3, kind: output, shape index: {}]  }
   0x1   :  { %1249 = sst [smem:[#allocation12_spill]] %s1246_s1 }
   0x2   :  { %8 = vsyncpa [#allocation4], 0 }
   0x3   :  { %10 = vsyncpa [#allocation4 + $0x1], 0 }
   0x4   :  { %11 = vsyncpa [#allocation7], 0 }
   0x5   :  { %12 = vsyncpa [#allocation5], 0 }
   0x6   :  { %14 = vsyncpa [#allocation5 + $0x1], 0  ;;  %s1021_s12 = smov 0   ;;  %s1023_s13 = smov 0  }
   0x7   :  { %s1025_s14 = smov 0   ;;  %s1027_s15 = smov 0  }
   0x8   :  { %s1029_s16 = smov 0   ;;  %s1031_s17 = smov 0  }
   0x9 LB: > { %s712_s18 = sadd.s32 4294967295, %s992_s17   ;;  %s713_s19 = sadd.s32 4294967294, %s992_s17   ;;  %s992_s17 = sphi %s1031_s17, %s20_s17   ;;  %s988_s16 = sphi %s1029_s16, %s1262_s16   ;;  %s984_s15 = sphi %s1027_s15, %s1261_s15   ;;  %s980_s14 = sphi %s1025_s14, %s1260_s14   ;;  %s976_s13 = sphi %s1023_s13, %s1259_s13   ;;  %s972_s12 = sphi %s1021_s12, %s1258_s12  }
   0xa   : > { %p61_p0 = scmp.ne.s32.totalorder %s976_s13, %s972_s12  ;;  %p1055_p1 = scmp.eq.s32.totalorder %s712_s18, 0 }
   0xb   : > { %p1059_p2 = scmp.eq.s32.totalorder %s712_s18, 1  ;;  %p147_p3 = scmp.eq.s32.totalorder %s713_s19, 1 }
   0xc   : > { %p1065_p4 = por %p1055_p1, %p61_p0  ;;  %p714_p5 = scmp.ge.s32.totalorder %s992_s17, 1 }
   0xd   : > { %p1070_p6 = por %p147_p3, %p61_p0  ;;  %p154_p7 = scmp.lt.s32.totalorder %s992_s17, 3 }
   0xe   : > { %s1254_s1 = sld [smem:[#allocation12_spill]]  ;;  %s994_s28 = smov [#allocation6]  }
   0xf   : > { %p1078_p8 = pnand %p714_p5, %p154_p7  ;;  %s171_s29 = sshll.u32 %s994_s28, 4  ;;  %s172_s29 = int_to_ptr.vmem [resolvable:$true] %s171_s29 }
  0x10   : > { %p717_p11 = scmp.ge.s32.totalorder %s992_s17, 2  ;;  %s995_s30 = smov 128  }
  0x11   : > { %p774_p9 = pneg %p1078_p8  ;;  %s996_s4 = smov 8  }
  0x12   : > { %s39_s5 = sadd.s32 1, %s988_s16  ;;  %s48_s6 = sadd.s32 1, %s980_s14 }
  0x13   : > { %p775_p10 = pnand %p774_p9, %p1055_p1  ;;  %p41_p12 = scmp.ge.s32.totalorder %s39_s5, 2 }
  0x14   : > { %s169_s26 = sshll.u32 %s1254_s1, 4  ;;  %p55_p13 = scmp.ne.s32.totalorder %s980_s14, %s976_s13  ;;  %s170_s26 = int_to_ptr.hbm [resolvable:$true] %s169_s26 }
  0x15   : > { %777 = dma.hbm_to_vmem [thread:$0]  (!%p775_p10), %s170_s26, 4096, %s172_s29, [#allocation7], %s995_s30, %s995_s30, %s996_s4  }
  0x16   : > { %p56_p0 = scmp.eq.s32.totalorder %s992_s17, 0  ;;  %s1264_s5 = smov (%p41_p12, %s39_s5), 0 }
  0x17   : > { %p1100_p5 = por %p1059_p2, %p55_p13  ;;  %s43_s9 = ssub.s32 %s988_s16, %s1264_s5 }
  0x18   : > { %p1094_p3 = por %p56_p0, %p55_p13  ;;  %p787_p7 = scmp.lt.s32.totalorder %s992_s17, 2 }
  0x19   : > { %p46_p9 = scmp.eq.s32.totalorder %s43_s9, 0  ;;  %s191_s10 = sand.u32 1, %s980_s14  }
  0x1a   : > { %s718_s11 = sshll.u32 %s191_s10, 8  ;;  %s732_s19 = sshll.u32 %s988_s16, 8 }
  0x1b   : > { %s1109_s18 = scalar_select %p46_p9, %s980_s14, %s48_s6  }
  0x1c   : > { %s203_s26 = scalar_lea.hbm %s1245_s0, %s732_s19  ;;  %s195_s28 = scalar_lea.vmem [#allocation3], %s718_s11 }
  0x1d   : > { %s206_s29 = sshll.u32 %s195_s28, 4  ;;  %s204_s21 = sshll.u32 %s203_s26, 4  ;;  %s207_s29 = int_to_ptr.vmem [resolvable:$true] %s206_s29  ;;  %s205_s21 = int_to_ptr.hbm [resolvable:$true] %s204_s21 }
  0x1e   : > { %p779_p2 = pnand %p787_p7, %p1094_p3  ;;  %s192_s30 = scalar_lea.sflag [#allocation4], %s191_s10 }
  0x1f   : > { %s997_s4 = smov 256   ;;  %s998_s1 = smov 16  }
  0x20   : > { %781 = dma.hbm_to_vmem [thread:$0]  (!%p779_p2), %s205_s21, 4096, %s207_s29, %s192_s30, %s997_s4, %s997_s4, %s998_s1  }
  0x21   : > { %218 = sbr.rel (%p1078_p8) target bundleno = 270 (0x10e), region = 32  ;;  %s1120_s6 = sand.u32 (!%p1078_p8), 1, %s976_s13  }
  0x22   : > { %s723_s9 = sshll.u32 (!%p1078_p8), %s1120_s6, 8  ;;  %s221_s11 = scalar_lea.sflag (!%p1078_p8), [#allocation4], %s1120_s6 }
  0x23   : > { %s1124_s19 = scalar_lea.vmem (!%p1078_p8), [#allocation3], %s723_s9 }
  0x26   : > { %959 = dma.done.wait (%p1065_p4), %s221_s11, 4096  }
  0x27   : > { %961 = vsyncadd (%p1065_p4), %s221_s11, 4294963200 }
  0x28   : > { %963 = dma.done.wait (%p1055_p1), [#allocation7], 4096  }
  0x29   : > { %965 = vsyncadd (%p1055_p1), [#allocation7], 4294963200  ;;  %v346_v0 = vld [vmem:[#allocation6 + $0x78] sm:$0xff]  ;;  %v345_v2 = vld [vmem:[#allocation6 + $0x70] sm:$0xff]  ;;  %s725_s1 = sshll.u32 %s1120_s6, 7  ;;  %s733_s7 = sshll.u32 %s984_s15, 7 }
  0x2a   : > { %v362_v1 = vld [vmem:[#allocation6 + $0xf8] sm:$0xff]  ;;  %734 = vmatpush.msra.mxu2 %v346_v0  ;;  %v361_v3 = vld [vmem:[#allocation6 + $0xf0] sm:$0xff]  ;;  %v344_v4 = vld [vmem:[#allocation6 + $0x68] sm:$0xff]  ;;  %363 = vmatpush.msra.mxu0 %v346_v0  ;;  %s1173_s27 = scalar_lea.vmem [#allocation8], %s725_s1  ;;  %s593_s25 = scalar_lea.hbm %s1248_s3, %s733_s7 }
  0x2b   : > { %750 = vmatpush.msra.mxu3 %v362_v1  ;;  %v360_v5 = vld [vmem:[#allocation6 + $0xe8] sm:$0xff]  ;;  %428 = vmatpush.msra.mxu1 %v362_v1  ;;  %v343_v6 = vld [vmem:[#allocation6 + $0x60] sm:$0xff]  ;;  %v342_v8 = vld [vmem:[#allocation6 + $0x58] sm:$0xff]  ;;  %s594_s26 = sshll.u32 %s1173_s27, 4  ;;  %s596_s28 = sshll.u32 %s593_s25, 4  ;;  %s595_s26 = int_to_ptr.vmem [resolvable:$true] %s594_s26  ;;  %s597_s28 = int_to_ptr.hbm [resolvable:$true] %s596_s28 }
  0x2c   : > { %735 = vmatpush.msra.mxu2 %v345_v2  ;;  %v359_v7 = vld [vmem:[#allocation6 + $0xe0] sm:$0xff]  ;;  %364 = vmatpush.msra.mxu0 %v345_v2  ;;  %v358_v9 = vld [vmem:[#allocation6 + $0xd8] sm:$0xff]  ;;  %v341_v10 = vld [vmem:[#allocation6 + $0x50] sm:$0xff]  ;;  %s581_s15 = scalar_lea.sflag [#allocation5], %s1120_s6  ;;  %s920_s29 = sshra.s32 %s597_s28, 4  ;;  %s921_s29 = int_to_ptr.hbm [resolvable:$true] %s920_s29 }
  0x2d   : > { %751 = vmatpush.msra.mxu3 %v361_v3  ;;  %429 = vmatpush.msra.mxu1 %v361_v3  ;;  %v357_v11 = vld [vmem:[#allocation6 + $0xd0] sm:$0xff]  ;;  %v340_v12 = vld [vmem:[#allocation6 + $0x48] sm:$0xff]  ;;  %v339_v14 = vld [vmem:[#allocation6 + $0x40] sm:$0xff]  ;;  %s922_s21 = scalar_lea.hbm %s921_s29, 128  ;;  %s926_s9 = scalar_lea.hbm %s1248_s3, 256 }
  0x2e   : > { %736 = vmatpush.msra.mxu2 %v344_v4  ;;  %365 = vmatpush.msra.mxu0 %v344_v4  ;;  %v356_v13 = vld [vmem:[#allocation6 + $0xc8] sm:$0xff]  ;;  %v355_v15 = vld [vmem:[#allocation6 + $0xc0] sm:$0xff]  ;;  %v338_v16 = vld [vmem:[#allocation6 + $0x38] sm:$0xff]  ;;  %p923_p1 = scmp.ne.s32.totalorder %s921_s29, %s922_s21  ;;  %p927_p10 = scmp.lt.s32.totalorder %s921_s29, %s1248_s3 }
  0x2f   : > { %752 = vmatpush.msra.mxu3 %v360_v5  ;;  %430 = vmatpush.msra.mxu1 %v360_v5  ;;  %v354_v17 = vld [vmem:[#allocation6 + $0xb8] sm:$0xff]  ;;  %v337_v18 = vld [vmem:[#allocation6 + $0x30] sm:$0xff]  ;;  %v336_v20 = vld [vmem:[#allocation6 + $0x28] sm:$0xff]  ;;  %p928_p12 = scmp.lt.s32.totalorder %s926_s9, %s922_s21 }
  0x30   : > { %737 = vmatpush.msra.mxu2 %v343_v6  ;;  %366 = vmatpush.msra.mxu0 %v343_v6  ;;  %v353_v19 = vld [vmem:[#allocation6 + $0xb0] sm:$0xff]  ;;  %v352_v21 = vld [vmem:[#allocation6 + $0xa8] sm:$0xff]  ;;  %v335_v22 = vld [vmem:[#allocation6 + $0x20] sm:$0xff]  ;;  %p924_p4 = pnand %p923_p1, %p1100_p5 }
  0x31   : > { %753 = vmatpush.msra.mxu3 %v359_v7  ;;  %431 = vmatpush.msra.mxu1 %v359_v7  ;;  %v351_v23 = vld [vmem:[#allocation6 + $0xa0] sm:$0xff]  ;;  %v334_v24 = vld [vmem:[#allocation6 + $0x18] sm:$0xff]  ;;  %v333_v26 = vld [vmem:[#allocation6 + $0x10] sm:$0xff]  ;;  %p929_p13 = por %p928_p12, %p927_p10 }
  0x32   : > { %738 = vmatpush.msra.mxu2 %v342_v8  ;;  %367 = vmatpush.msra.mxu0 %v342_v8  ;;  %v350_v25 = vld [vmem:[#allocation6 + $0x98] sm:$0xff]  ;;  %v349_v27 = vld [vmem:[#allocation6 + $0x90] sm:$0xff]  ;;  %v332_v28 = vld [vmem:[#allocation6 + $0x8] sm:$0xff]  ;;  %p925_p8 = pneg %p924_p4 }
  0x33   : > { %754 = vmatpush.msra.mxu3 %v358_v9  ;;  %432 = vmatpush.msra.mxu1 %v358_v9  ;;  %v348_v29 = vld [vmem:[#allocation6 + $0x88] sm:$0xff]  ;;  %v331_v30 = vld [vmem:[#allocation6] sm:$0xff]  ;;  %v317_v36 = vld [vmem:[%s1124_s19 + $0x90] sm:$0xff] }
  0x34   : > { %739 = vmatpush.msra.mxu2 %v341_v10  ;;  %368 = vmatpush.msra.mxu0 %v341_v10  ;;  %v347_v31 = vld [vmem:[#allocation6 + $0x80] sm:$0xff]  ;;  %v316_v33 = vld [vmem:[%s1124_s19 + $0x88] sm:$0xff]  ;;  %v318_v37 = vld [vmem:[%s1124_s19 + $0x98] sm:$0xff]  ;;  %p930_p0 = pnand %p929_p13, %p925_p8 }
  0x35   : > { %755 = vmatpush.msra.mxu3 %v357_v11  ;;  %433 = vmatpush.msra.mxu1 %v357_v11  ;;  %v315_v32 = vld [vmem:[%s1124_s19 + $0x80] sm:$0xff]  ;;  %v300_v35 = vld [vmem:[%s1124_s19 + $0x8] sm:$0xff]  ;;  %v301_v38 = vld [vmem:[%s1124_s19 + $0x10] sm:$0xff] }
  0x36   : > { %740 = vmatpush.msra.mxu2 %v340_v12  ;;  %369 = vmatpush.msra.mxu0 %v340_v12  ;;  %v299_v34 = vld [vmem:[%s1124_s19] sm:$0xff]  ;;  %v302_v39 = vld [vmem:[%s1124_s19 + $0x18] sm:$0xff]  ;;  %v320_v41 = vld [vmem:[%s1124_s19 + $0xa8] sm:$0xff] }
  0x37   : > { %756 = vmatpush.msra.mxu3 %v356_v13  ;;  %434 = vmatpush.msra.mxu1 %v356_v13  ;;  %v319_v40 = vld [vmem:[%s1124_s19 + $0xa0] sm:$0xff]  ;;  %v304_v43 = vld [vmem:[%s1124_s19 + $0x28] sm:$0xff]  ;;  %v321_v44 = vld [vmem:[%s1124_s19 + $0xb0] sm:$0xff] }
  0x38   : > { %741 = vmatpush.msra.mxu2 %v339_v14  ;;  %370 = vmatpush.msra.mxu0 %v339_v14  ;;  %v303_v42 = vld [vmem:[%s1124_s19 + $0x20] sm:$0xff]  ;;  %v322_v45 = vld [vmem:[%s1124_s19 + $0xb8] sm:$0xff]  ;;  %v305_v46 = vld [vmem:[%s1124_s19 + $0x30] sm:$0xff] }
  0x39   : > { %757 = vmatpush.msra.mxu3 %v355_v15  ;;  %435 = vmatpush.msra.mxu1 %v355_v15  ;;  %v306_v47 = vld [vmem:[%s1124_s19 + $0x38] sm:$0xff]  ;;  %v323_v48 = vld [vmem:[%s1124_s19 + $0xc0] sm:$0xff]  ;;  %v324_v49 = vld [vmem:[%s1124_s19 + $0xc8] sm:$0xff] }
  0x3a   : > { %742 = vmatpush.msra.mxu2 %v338_v16  ;;  %371 = vmatpush.msra.mxu0 %v338_v16  ;;  %v307_v50 = vld [vmem:[%s1124_s19 + $0x40] sm:$0xff]  ;;  %v308_v51 = vld [vmem:[%s1124_s19 + $0x48] sm:$0xff]  ;;  %v325_v52 = vld [vmem:[%s1124_s19 + $0xd0] sm:$0xff] }
  0x3b   : > { %758 = vmatpush.msra.mxu3 %v354_v17  ;;  %436 = vmatpush.msra.mxu1 %v354_v17  ;;  %v326_v53 = vld [vmem:[%s1124_s19 + $0xd8] sm:$0xff]  ;;  %v309_v54 = vld [vmem:[%s1124_s19 + $0x50] sm:$0xff]  ;;  %v327_v56 = vld [vmem:[%s1124_s19 + $0xe0] sm:$0xff] }
  0x3c   : > { %743 = vmatpush.msra.mxu2 %v337_v18  ;;  %372 = vmatpush.msra.mxu0 %v337_v18  ;;  %v310_v55 = vld [vmem:[%s1124_s19 + $0x58] sm:$0xff]  ;;  %v328_v57 = vld [vmem:[%s1124_s19 + $0xe8] sm:$0xff]  ;;  %v311_v58 = vld [vmem:[%s1124_s19 + $0x60] sm:$0xff] }
  0x3d   : > { %759 = vmatpush.msra.mxu3 %v353_v19  ;;  %437 = vmatpush.msra.mxu1 %v353_v19  ;;  %v312_v59 = vld [vmem:[%s1124_s19 + $0x68] sm:$0xff]  ;;  %v329_v60 = vld [vmem:[%s1124_s19 + $0xf0] sm:$0xff]  ;;  %v330_v61 = vld [vmem:[%s1124_s19 + $0xf8] sm:$0xff] }
  0x3e   : > { %744 = vmatpush.msra.mxu2 %v336_v20  ;;  %373 = vmatpush.msra.mxu0 %v336_v20  ;;  %v313_v62 = vld [vmem:[%s1124_s19 + $0x70] sm:$0xff]  ;;  %v314_v63 = vld [vmem:[%s1124_s19 + $0x78] sm:$0xff]  ;;  %v1170_v0 = vld [vmem:[%s1247_s2] ss:$0 sm:$0xff] }
  0x3f   : > { %760 = vmatpush.msra.mxu3 %v352_v21  ;;  %438 = vmatpush.msra.mxu1 %v352_v21 }
  0x40   : > { %745 = vmatpush.msra.mxu2 %v335_v22  ;;  %374 = vmatpush.msra.mxu0 %v335_v22 }
  0x41   : > { %761 = vmatpush.msra.mxu3 %v351_v23  ;;  %439 = vmatpush.msra.mxu1 %v351_v23 }
  0x42   : > { %746 = vmatpush.msra.mxu2 %v334_v24  ;;  %375 = vmatpush.msra.mxu0 %v334_v24 }
  0x43   : > { %762 = vmatpush.msra.mxu3 %v350_v25  ;;  %440 = vmatpush.msra.mxu1 %v350_v25 }
  0x44   : > { %747 = vmatpush.msra.mxu2 %v333_v26  ;;  %376 = vmatpush.msra.mxu0 %v333_v26 }
  0x45   : > { %763 = vmatpush.msra.mxu3 %v349_v27  ;;  %441 = vmatpush.msra.mxu1 %v349_v27 }
  0x46   : > { %748 = vmatpush.msra.mxu2 %v332_v28  ;;  %377 = vmatpush.msra.mxu0 %v332_v28 }
  0x47   : > { %764 = vmatpush.msra.mxu3 %v348_v29  ;;  %442 = vmatpush.msra.mxu1 %v348_v29 }
  0x48   : > { %749 = vmatpush.msra.mxu2 %v331_v30  ;;  %378 = vmatpush.msra.mxu0 %v331_v30 }
  0x49   : > { %765 = vmatpush.msra.mxu3 %v347_v31  ;;  %403 = vmatmul.f32.vlgmr.msra.gmra.mxu2 %v315_v32 }
  0x4a   : > { %468 = vmatmul.f32.vlgmr.msra.gmra.mxu3 %v316_v33  ;;  %443 = vmatpush.msra.mxu1 %v347_v31 }
  0x4b   : > { %379 = vmatmul.f32.vlgmr.msra.gmra.mxu0 %v299_v34  ;;  %444 = vmatmul.f32.vlgmr.msra.gmra.mxu1 %v300_v35 }
  0x51   : > { %406 = vmatmul.f32.gmra.mxu2 %v317_v36 }
  0x52   : > { %471 = vmatmul.f32.gmra.mxu3 %v318_v37 }
  0x53   : > { %382 = vmatmul.f32.gmra.mxu0 %v301_v38  ;;  %447 = vmatmul.f32.gmra.mxu1 %v302_v39 }
  0x59   : > { %409 = vmatmul.f32.gmra.mxu2 %v319_v40 }
  0x5a   : > { %474 = vmatmul.f32.gmra.mxu3 %v320_v41 }
  0x5b   : > { %385 = vmatmul.f32.gmra.mxu0 %v303_v42  ;;  %450 = vmatmul.f32.gmra.mxu1 %v304_v43 }
  0x61   : > { %412 = vmatmul.f32.gmra.mxu2 %v321_v44 }
  0x62   : > { %477 = vmatmul.f32.gmra.mxu3 %v322_v45 }
  0x63   : > { %388 = vmatmul.f32.gmra.mxu0 %v305_v46  ;;  %453 = vmatmul.f32.gmra.mxu1 %v306_v47 }
  0x69   : > { %415 = vmatmul.f32.gmra.mxu2 %v323_v48 }
  0x6a   : > { %480 = vmatmul.f32.gmra.mxu3 %v324_v49 }
  0x6b   : > { %391 = vmatmul.f32.gmra.mxu0 %v307_v50  ;;  %456 = vmatmul.f32.gmra.mxu1 %v308_v51 }
  0x71   : > { %418 = vmatmul.f32.gmra.mxu2 %v325_v52 }
  0x72   : > { %483 = vmatmul.f32.gmra.mxu3 %v326_v53 }
  0x73   : > { %394 = vmatmul.f32.gmra.mxu0 %v309_v54  ;;  %459 = vmatmul.f32.gmra.mxu1 %v310_v55 }
  0x79   : > { %421 = vmatmul.f32.gmra.mxu2 %v327_v56 }
  0x7a   : > { %486 = vmatmul.f32.gmra.mxu3 %v328_v57 }
  0x7b   : > { %397 = vmatmul.f32.gmra.mxu0 %v311_v58  ;;  %462 = vmatmul.f32.gmra.mxu1 %v312_v59 }
  0x81   : > { %424 = vmatmul.f32.gmra.mxu2 %v329_v60 }
  0x82   : > { %489 = vmatmul.f32.gmra.mxu3 %v330_v61 }
  0x83   : > { %400 = vmatmul.f32.gmra.mxu0 %v313_v62  ;;  %465 = vmatmul.f32.gmra.mxu1 %v314_v63 }
  0xc8   : > { %v380_v1 = vpop.f32.mrf.mxu0  ;;  %v445_v2 = vpop.f32.mrf.mxu1 }
  0xc9   : > { %v446_v3 = vadd.f32 %v445_v2, %v380_v1 }
  0xcb   : > { %v548_v4 = vadd.f32 %v1170_v0, %v446_v3 }
  0xcc   : > { %v404_v5 = vpop.f32.mrf.mxu2 }
  0xcd   : > { %v469_v6 = vpop.f32.mrf.mxu3  ;;  %564 = vst [vmem:[%s1173_s27] sm:$0xff] %v548_v4 }
  0xce   : > { %v470_v7 = vadd.f32 %v469_v6, %v404_v5 }
  0xd0   : > { %v556_v8 = vadd.f32 %v1170_v0, %v470_v7  ;;  %v383_v9 = vpop.f32.mrf.mxu0  ;;  %v448_v10 = vpop.f32.mrf.mxu1 }
  0xd1   : > { %v449_v11 = vadd.f32 %v448_v10, %v383_v9 }
  0xd2   : > { %572 = vst [vmem:[%s1173_s27 + $0x40] sm:$0xff] %v556_v8 }
  0xd3   : > { %v549_v12 = vadd.f32 %v1170_v0, %v449_v11 }
  0xd4   : > { %v407_v13 = vpop.f32.mrf.mxu2 }
  0xd5   : > { %v472_v14 = vpop.f32.mrf.mxu3  ;;  %565 = vst [vmem:[%s1173_s27 + $0x8] sm:$0xff] %v549_v12 }
  0xd6   : > { %v473_v15 = vadd.f32 %v472_v14, %v407_v13 }
  0xd8   : > { %v557_v16 = vadd.f32 %v1170_v0, %v473_v15  ;;  %v386_v17 = vpop.f32.mrf.mxu0  ;;  %v451_v18 = vpop.f32.mrf.mxu1 }
  0xd9   : > { %v452_v19 = vadd.f32 %v451_v18, %v386_v17 }
  0xda   : > { %573 = vst [vmem:[%s1173_s27 + $0x48] sm:$0xff] %v557_v16 }
  0xdb   : > { %v550_v20 = vadd.f32 %v1170_v0, %v452_v19 }
  0xdc   : > { %v410_v21 = vpop.f32.mrf.mxu2 }
  0xdd   : > { %v475_v22 = vpop.f32.mrf.mxu3  ;;  %566 = vst [vmem:[%s1173_s27 + $0x10] sm:$0xff] %v550_v20 }
  0xde   : > { %v476_v23 = vadd.f32 %v475_v22, %v410_v21 }
  0xe0   : > { %v558_v24 = vadd.f32 %v1170_v0, %v476_v23  ;;  %v389_v25 = vpop.f32.mrf.mxu0  ;;  %v454_v26 = vpop.f32.mrf.mxu1 }
  0xe1   : > { %v455_v27 = vadd.f32 %v454_v26, %v389_v25 }
  0xe2   : > { %574 = vst [vmem:[%s1173_s27 + $0x50] sm:$0xff] %v558_v24 }
  0xe3   : > { %v551_v28 = vadd.f32 %v1170_v0, %v455_v27 }
  0xe4   : > { %v413_v29 = vpop.f32.mrf.mxu2 }
  0xe5   : > { %v478_v30 = vpop.f32.mrf.mxu3  ;;  %567 = vst [vmem:[%s1173_s27 + $0x18] sm:$0xff] %v551_v28 }
  0xe6   : > { %v479_v31 = vadd.f32 %v478_v30, %v413_v29 }
  0xe8   : > { %v559_v32 = vadd.f32 %v1170_v0, %v479_v31  ;;  %v392_v33 = vpop.f32.mrf.mxu0  ;;  %v457_v34 = vpop.f32.mrf.mxu1 }
  0xe9   : > { %v458_v35 = vadd.f32 %v457_v34, %v392_v33 }
  0xea   : > { %575 = vst [vmem:[%s1173_s27 + $0x58] sm:$0xff] %v559_v32 }
  0xeb   : > { %v552_v36 = vadd.f32 %v1170_v0, %v458_v35 }
  0xec   : > { %v416_v37 = vpop.f32.mrf.mxu2 }
  0xed   : > { %v481_v38 = vpop.f32.mrf.mxu3  ;;  %568 = vst [vmem:[%s1173_s27 + $0x20] sm:$0xff] %v552_v36 }
  0xee   : > { %v482_v39 = vadd.f32 %v481_v38, %v416_v37 }
  0xf0   : > { %v560_v40 = vadd.f32 %v1170_v0, %v482_v39  ;;  %v395_v41 = vpop.f32.mrf.mxu0  ;;  %v460_v42 = vpop.f32.mrf.mxu1 }
  0xf1   : > { %v461_v43 = vadd.f32 %v460_v42, %v395_v41 }
  0xf2   : > { %576 = vst [vmem:[%s1173_s27 + $0x60] sm:$0xff] %v560_v40 }
  0xf3   : > { %v553_v44 = vadd.f32 %v1170_v0, %v461_v43 }
  0xf4   : > { %v419_v45 = vpop.f32.mrf.mxu2 }
  0xf5   : > { %v484_v46 = vpop.f32.mrf.mxu3  ;;  %569 = vst [vmem:[%s1173_s27 + $0x28] sm:$0xff] %v553_v44 }
  0xf6   : > { %v485_v47 = vadd.f32 %v484_v46, %v419_v45 }
  0xf8   : > { %v561_v48 = vadd.f32 %v1170_v0, %v485_v47  ;;  %v398_v49 = vpop.f32.mrf.mxu0  ;;  %v463_v50 = vpop.f32.mrf.mxu1 }
  0xf9   : > { %v464_v51 = vadd.f32 %v463_v50, %v398_v49 }
  0xfa   : > { %577 = vst [vmem:[%s1173_s27 + $0x68] sm:$0xff] %v561_v48 }
  0xfb   : > { %v554_v52 = vadd.f32 %v1170_v0, %v464_v51 }
  0xfc   : > { %v422_v53 = vpop.f32.mrf.mxu2 }
  0xfd   : > { %v487_v54 = vpop.f32.mrf.mxu3  ;;  %570 = vst [vmem:[%s1173_s27 + $0x30] sm:$0xff] %v554_v52 }
  0xfe   : > { %v488_v55 = vadd.f32 %v487_v54, %v422_v53 }
 0x100   : > { %v562_v56 = vadd.f32 %v1170_v0, %v488_v55  ;;  %v401_v57 = vpop.f32.mrf.mxu0  ;;  %v466_v58 = vpop.f32.mrf.mxu1 }
 0x101   : > { %v467_v59 = vadd.f32 %v466_v58, %v401_v57 }
 0x102   : > { %578 = vst [vmem:[%s1173_s27 + $0x70] sm:$0xff] %v562_v56 }
 0x103   : > { %v555_v60 = vadd.f32 %v1170_v0, %v467_v59 }
 0x104   : > { %v425_v61 = vpop.f32.mrf.mxu2 }
 0x105   : > { %v490_v62 = vpop.f32.mrf.mxu3  ;;  %571 = vst [vmem:[%s1173_s27 + $0x38] sm:$0xff] %v555_v60 }
 0x106   : > { %v491_v63 = vadd.f32 %v490_v62, %v425_v61 }
 0x108   : > { %v563_v1 = vadd.f32 %v1170_v0, %v491_v63 }
 0x10a   : > { %579 = vst [vmem:[%s1173_s27 + $0x78] sm:$0xff] %v563_v1 }
 0x10b   : > { %933 = shalt.err (!%p930_p0)
}
 0x10c   : > { %s999_s6 = smov 128   ;;  %s1000_s1 = smov 8  }
 0x10d   : > { %772 = dma.vmem_to_hbm [thread:$0]  (%p1100_p5), %s595_s26, 2048, %s597_s28, %s581_s15, %s999_s6, %s999_s6, %s1000_s1  }
 0x10e PF: > { %s611_s20 = sand.u32 1, %s972_s12   ;;  %p783_p3 = pnand %p717_p11, %p1070_p6 }
 0x10f   : > { %s612_s22 = scalar_lea.sflag [#allocation5], %s611_s20 }
 0x110   : > { %p784_p7 = pneg %p783_p3 }
 0x112   : > { %967 = dma.done.wait (%p784_p7), %s612_s22, 2048  }
 0x113   : > { %969 = vsyncadd (%p784_p7), %s612_s22, 4294965248  ;;  %s20_s17 = sadd.s32 1, %s992_s17   ;;  %s1258_s12 = smov %s976_s13 }
 0x114   : > { %p17_p9 = scmp.ge.s32.totalorder %s20_s17, 4   ;;  %s1259_s13 = smov %s980_s14 }
 0x115   : > { %s1260_s14 = smov %s1109_s18  ;;  %s1261_s15 = smov %s988_s16 }
 0x116   : > { %s1262_s16 = smov %s1264_s5  ;;  %19 = sbr.rel (!%p17_p9) target bundleno = 9 (0x9), region = 93 }
 0x11b   :  { %618 = vsyncpa [#allocation4], 1 }
 0x11c   :  { %620 = vsyncpa [#allocation4 + $0x1], 1 }
 0x11d   :  { %621 = vsyncpa [#allocation7], 1 }
 0x11e   :  { %622 = vsyncpa [#allocation5], 1 }
 0x11f   :  { %624 = vsyncpa [#allocation5 + $0x1], 1 }

</bundles_post_ra>
